<compile_context>
chip_gen: v7x
topology: tpu7x:2x2x1
jax: 0.10.0
libtpu: 0.0.40
codegen_flags: <defaults>
</compile_context>

<pallas_src>
import functools

import jax
import jax.numpy as jnp
from jax.experimental import pallas as pl
from jax.experimental.pallas import tpu as pltpu

# Layer dims in PyTorch nn.Linear layout: (out_features, in_features).
_LAYER_DIMS = ((20, 10), (60, 20), (20, 60), (4, 20))
_IN_DIM = 10
_OUT_DIM = 4
_WPAD = 64      # per-layer slot size inside the packed weight/bias operands
_LANE = 128


def _round_up(x, m):
    return ((x + m - 1) // m) * m


def mlp_kernel(xT_ref, w_ref, b_ref, oT_ref):
    """Fused 4-layer MLP on one transposed (10, tb) batch tile.

    Everything lives in (features, batch) layout so the batch dim is on the
    128-lane axis: activations, matmuls and the final store are lane-dense.
    """
    h = xT_ref[...]                                    # (10, tb) f32

    for i, (dout, din) in enumerate(_LAYER_DIMS):
        w = w_ref[i, :dout, :din]                      # static slice, exact shape
        b = b_ref[i, :dout, :]                         # (dout, 1)
        # PyTorch Linear y = x W^T + b  ==>  y^T = W @ x^T + b
        h = jnp.dot(w, h, preferred_element_type=jnp.float32) + b
        h = jnp.maximum(h, 0.0)                        # Dropout(eval)=identity, ReLU

    oT_ref[...] = h.astype(oT_ref.dtype)               # (4, tb) lane-dense store


def _pack_params(params):
    """Pack 4 weights / 4 biases into one slab each (sliced in-kernel)."""
    w_all = jnp.zeros((4, _WPAD, _WPAD), jnp.float32)
    b_all = jnp.zeros((4, _WPAD, 1), jnp.float32)
    for i, (dout, din) in enumerate(_LAYER_DIMS):
        w_all = w_all.at[i, :dout, :din].set(params[f"w{i + 1}"].astype(jnp.float32))
        b_all = b_all.at[i, :dout, 0].set(params[f"b{i + 1}"].astype(jnp.float32))
    return w_all, b_all


def _choose_tile(batch, tile_b):
    """128-aligned batch (lane) tile; >=2 grid steps when possible (v7x 2 TCs)."""
    if batch < 2 * _LANE:
        return batch, 1                                 # single full-extent block
    tb = min(tile_b, _round_up(pl.cdiv(batch, 2), _LANE))
    return tb, pl.cdiv(batch, tb)


def reference_forward(x, params):
    """Pure-JAX f32 reference (eval-mode dropout = identity)."""
    h = x
    for i in range(1, 5):
        h = jnp.maximum(h @ params[f"w{i}"].T + params[f"b{i}"], 0.0)
    return h


@functools.partial(jax.jit, static_argnames=("tile_b", "min_pallas_batch"))
def line_module_forward(x, params, *, tile_b=4096, min_pallas_batch=256):
    """x: [B, 10] float32 -> [B, 4] float32 (eval-mode forward)."""
    B = x.shape[0]

    # Tiny batches: fixed pallas_call launch cost exceeds the work; let XLA
    # fuse the four matmuls instead (perf-review item 7).
    if B < min_pallas_batch:
        return reference_forward(x.astype(jnp.float32), params)

    w_all, b_all = _pack_params(params)
    xT = x.astype(jnp.float32).T                        # (10, B), tiny copy

    tb, steps = _choose_tile(B, tile_b)

    def pinned(shape):
        # Full-array block, same index every grid step -> stays VMEM-resident.
        return pl.BlockSpec(shape, lambda i: (0,) * len(shape))

    outT = pl.pallas_call(
        mlp_kernel,
        out_shape=jax.ShapeDtypeStruct((_OUT_DIM, B), jnp.float32),
        grid=(steps,),
        in_specs=[
            pl.BlockSpec((_IN_DIM, tb), lambda i: (0, i)),   # x^T tiled on batch lanes
            pinned(w_all.shape),                             # packed weights
            pinned(b_all.shape),                             # packed biases
        ],
        out_specs=pl.BlockSpec((_OUT_DIM, tb), lambda i: (0, i)),
        compiler_params=pltpu.CompilerParams(
            dimension_semantics=("parallel",),   # megacore sharding on v7x
            vmem_limit_bytes=32 * 1024 * 1024,   # generous; usage is a few MB max
        ),
    )(xT, w_all, b_all)

    return outT.T                                        # (B, 4)


def init_params(key):
    """Xavier-normal weights (Line_Module.init_weight), PyTorch-default uniform
    biases.  Stored in PyTorch layout: W:[out,in], b:[out]."""
    params = {}
    for idx, (fan_out, fan_in) in enumerate(_LAYER_DIMS, start=1):
        key, kw, kb = jax.random.split(key, 3)
        std = (2.0 / (fan_in + fan_out)) ** 0.5          # xavier_normal_
        w = jax.random.normal(kw, (fan_out, fan_in), dtype=jnp.float32) * std
        bound = 1.0 / (fan_in ** 0.5)
        b = jax.random.uniform(kb, (fan_out,), jnp.float32, -bound, bound)
        params[f"w{idx}"] = w
        params[f"b{idx}"] = b
    return params


if __name__ == "__main__":
    key = jax.random.PRNGKey(0)
    key, kx1, kx2 = jax.random.split(key, 3)
    params = init_params(key)

    # Matches Line_Module.test_model(): x of shape (20, 10).  min_pallas_batch=0
    # forces the Pallas path so the kernel itself is exercised at small shape.
    x_small = jax.random.normal(kx1, (20, 10), dtype=jnp.float32)
    out_small = jax.block_until_ready(
        line_module_forward(x_small, params, min_pallas_batch=0))
    ref_small = reference_forward(x_small, params)
    assert out_small.shape == (20, 4), out_small.shape
    assert jnp.allclose(out_small, ref_small, atol=2e-2, rtol=2e-2), \
        float(jnp.max(jnp.abs(out_small - ref_small)))

    # Multi-tile path: >=2 grid steps, batch not a multiple of 128 or the tile,
    # boundary block handled by Pallas (no wrapper pad/slice copies).
    x_big = jax.random.normal(kx2, (1040, 10), dtype=jnp.float32)
    out_big = jax.block_until_ready(line_module_forward(x_big, params))
    ref_big = reference_forward(x_big, params)
    assert out_big.shape == (1040, 4), out_big.shape
    assert jnp.allclose(out_big, ref_big, atol=2e-2, rtol=2e-2), \
        float(jnp.max(jnp.abs(out_big - ref_big)))

    print("KERNEL_OK")
</pallas_src>

<mosaic_0001>
module attributes {stable_mosaic.version = 11 : i64} {
  func.func @mlp_kernel(%arg0: i32, %arg1: memref<10x20xf32, #tpu.memory_space<vmem>>, %arg2: memref<4x64x64xf32, #tpu.memory_space<vmem>>, %arg3: memref<4x64x1xf32, #tpu.memory_space<vmem>>, %arg4: memref<4x20xf32, #tpu.memory_space<vmem>>) attributes {dimension_semantics = [#tpu.dimension_semantics<parallel>], iteration_bounds = array<i64: 1>, scalar_prefetch = 0 : i64, scratch_operands = 0 : i64, tpu.core_type = #tpu.core_type<tc>, window_params = [{transform_indices = @transform_0, window_bounds = array<i64: 10, 20>}, {pipeline_mode = #tpu.pipeline_mode<synchronous>, transform_indices = @transform_1, window_bounds = array<i64: 4, 64, 64>}, {pipeline_mode = #tpu.pipeline_mode<synchronous>, transform_indices = @transform_2, window_bounds = array<i64: 4, 64, 1>}, {transform_indices = @transform_3, window_bounds = array<i64: 4, 20>}]} {
    %c0 = arith.constant 0 : index
    %c0_0 = arith.constant 0 : index
    %0 = vector.load %arg1[%c0, %c0_0] : memref<10x20xf32, #tpu.memory_space<vmem>>, vector<10x20xf32>
    %c0_1 = arith.constant 0 : index
    %c0_2 = arith.constant 0 : index
    %c0_3 = arith.constant 0 : index
    %1 = vector.load %arg2[%c0_1, %c0_2, %c0_3] : memref<4x64x64xf32, #tpu.memory_space<vmem>>, vector<1x20x10xf32>
    %2 = vector.shape_cast %1 : vector<1x20x10xf32> to vector<20x10xf32>
    %c0_4 = arith.constant 0 : index
    %c0_5 = arith.constant 0 : index
    %c0_6 = arith.constant 0 : index
    %3 = vector.load %arg3[%c0_4, %c0_5, %c0_6] : memref<4x64x1xf32, #tpu.memory_space<vmem>>, vector<1x20x1xf32>
    %4 = vector.shape_cast %3 : vector<1x20x1xf32> to vector<20x1xf32>
    %cst = arith.constant dense<0.000000e+00> : vector<20x20xf32>
    %5 = tpu.matmul %2, %0, %cst {dimension_numbers = #tpu.dot_dimension_numbers<[1], [0], [0], [1], [0, 0, 1, 1], [], []>} : vector<20x10xf32>, vector<10x20xf32>, vector<20x20xf32> -> vector<20x20xf32>
    %6 = vector.broadcast %4 : vector<20x1xf32> to vector<20x20xf32>
    %7 = arith.addf %5, %6 : vector<20x20xf32>
    %cst_7 = arith.constant 0.000000e+00 : f32
    %8 = vector.broadcast %cst_7 : f32 to vector<20x20xf32>
    %9 = arith.maximumf %7, %8 : vector<20x20xf32>
    %c1 = arith.constant 1 : index
    %c0_8 = arith.constant 0 : index
    %c0_9 = arith.constant 0 : index
    %10 = vector.load %arg2[%c1, %c0_8, %c0_9] : memref<4x64x64xf32, #tpu.memory_space<vmem>>, vector<1x60x20xf32>
    %11 = vector.shape_cast %10 : vector<1x60x20xf32> to vector<60x20xf32>
    %c1_10 = arith.constant 1 : index
    %c0_11 = arith.constant 0 : index
    %c0_12 = arith.constant 0 : index
    %12 = vector.load %arg3[%c1_10, %c0_11, %c0_12] : memref<4x64x1xf32, #tpu.memory_space<vmem>>, vector<1x60x1xf32>
    %13 = vector.shape_cast %12 : vector<1x60x1xf32> to vector<60x1xf32>
    %cst_13 = arith.constant dense<0.000000e+00> : vector<60x20xf32>
    %14 = tpu.matmul %11, %9, %cst_13 {dimension_numbers = #tpu.dot_dimension_numbers<[1], [0], [0], [1], [0, 0, 1, 1], [], []>} : vector<60x20xf32>, vector<20x20xf32>, vector<60x20xf32> -> vector<60x20xf32>
    %15 = vector.broadcast %13 : vector<60x1xf32> to vector<60x20xf32>
    %16 = arith.addf %14, %15 : vector<60x20xf32>
    %cst_14 = arith.constant 0.000000e+00 : f32
    %17 = vector.broadcast %cst_14 : f32 to vector<60x20xf32>
    %18 = arith.maximumf %16, %17 : vector<60x20xf32>
    %c2 = arith.constant 2 : index
    %c0_15 = arith.constant 0 : index
    %c0_16 = arith.constant 0 : index
    %19 = vector.load %arg2[%c2, %c0_15, %c0_16] : memref<4x64x64xf32, #tpu.memory_space<vmem>>, vector<1x20x60xf32>
    %20 = vector.shape_cast %19 : vector<1x20x60xf32> to vector<20x60xf32>
    %c2_17 = arith.constant 2 : index
    %c0_18 = arith.constant 0 : index
    %c0_19 = arith.constant 0 : index
    %21 = vector.load %arg3[%c2_17, %c0_18, %c0_19] : memref<4x64x1xf32, #tpu.memory_space<vmem>>, vector<1x20x1xf32>
    %22 = vector.shape_cast %21 : vector<1x20x1xf32> to vector<20x1xf32>
    %cst_20 = arith.constant dense<0.000000e+00> : vector<20x20xf32>
    %23 = tpu.matmul %20, %18, %cst_20 {dimension_numbers = #tpu.dot_dimension_numbers<[1], [0], [0], [1], [0, 0, 1, 1], [], []>} : vector<20x60xf32>, vector<60x20xf32>, vector<20x20xf32> -> vector<20x20xf32>
    %24 = vector.broadcast %22 : vector<20x1xf32> to vector<20x20xf32>
    %25 = arith.addf %23, %24 : vector<20x20xf32>
    %cst_21 = arith.constant 0.000000e+00 : f32
    %26 = vector.broadcast %cst_21 : f32 to vector<20x20xf32>
    %27 = arith.maximumf %25, %26 : vector<20x20xf32>
    %c3 = arith.constant 3 : index
    %c0_22 = arith.constant 0 : index
    %c0_23 = arith.constant 0 : index
    %28 = vector.load %arg2[%c3, %c0_22, %c0_23] : memref<4x64x64xf32, #tpu.memory_space<vmem>>, vector<1x4x20xf32>
    %29 = vector.shape_cast %28 : vector<1x4x20xf32> to vector<4x20xf32>
    %c3_24 = arith.constant 3 : index
    %c0_25 = arith.constant 0 : index
    %c0_26 = arith.constant 0 : index
    %30 = vector.load %arg3[%c3_24, %c0_25, %c0_26] : memref<4x64x1xf32, #tpu.memory_space<vmem>>, vector<1x4x1xf32>
    %31 = vector.shape_cast %30 : vector<1x4x1xf32> to vector<4x1xf32>
    %cst_27 = arith.constant dense<0.000000e+00> : vector<4x20xf32>
    %32 = tpu.matmul %29, %27, %cst_27 {dimension_numbers = #tpu.dot_dimension_numbers<[1], [0], [0], [1], [0, 0, 1, 1], [], []>} : vector<4x20xf32>, vector<20x20xf32>, vector<4x20xf32> -> vector<4x20xf32>
    %33 = vector.broadcast %31 : vector<4x1xf32> to vector<4x20xf32>
    %34 = arith.addf %32, %33 : vector<4x20xf32>
    %cst_28 = arith.constant 0.000000e+00 : f32
    %35 = vector.broadcast %cst_28 : f32 to vector<4x20xf32>
    %36 = arith.maximumf %34, %35 : vector<4x20xf32>
    %c0_29 = arith.constant 0 : index
    %c0_30 = arith.constant 0 : index
    %37 = vector.load %arg4[%c0_29, %c0_30] : memref<4x20xf32, #tpu.memory_space<vmem>>, vector<4x20xf32>
    tpu.vector_store %arg4[%c0_29, %c0_30], %36 {strides = array<i32>} : memref<4x20xf32, #tpu.memory_space<vmem>>, vector<4x20xf32>,
    return
  }
  func.func @transform_0(%arg0: i32) -> (i32, i32) {
    %c0_i32 = arith.constant 0 : i32
    %c0_i32_0 = arith.constant 0 : i32
    return %c0_i32, %arg0 : i32, i32
  }
  func.func @transform_1(%arg0: i32) -> (i32, i32, i32) {
    %c0_i32 = arith.constant 0 : i32
    %c0_i32_0 = arith.constant 0 : i32
    %c0_i32_1 = arith.constant 0 : i32
    %c0_i32_2 = arith.constant 0 : i32
    return %c0_i32, %c0_i32_0, %c0_i32_1 : i32, i32, i32
  }
  func.func @transform_2(%arg0: i32) -> (i32, i32, i32) {
    %c0_i32 = arith.constant 0 : i32
    %c0_i32_0 = arith.constant 0 : i32
    %c0_i32_1 = arith.constant 0 : i32
    %c0_i32_2 = arith.constant 0 : i32
    return %c0_i32, %c0_i32_0, %c0_i32_1 : i32, i32, i32
  }
  func.func @transform_3(%arg0: i32) -> (i32, i32) {
    %c0_i32 = arith.constant 0 : i32
    %c0_i32_0 = arith.constant 0 : i32
    return %c0_i32, %arg0 : i32, i32
  }
}

</mosaic_0001>

<bundles_post_ra>
// kernel: line_module_forward.1
= control target key start
LH: loop header
LB: loop body
LE: loop exit
PB: predicated region body
PF: predicated region fallthrough
CT: control target
= control target key end

     0   :  { %vm48_vm0 = vcmask 1041408   ;;  %v751_v2 = vmov 0.0|0.0   ;;  %vm752_vm1 = vmmov 1   ;;  %vm753_vm3 = vmmov 0   ;;  %s924_s0 = inlined_call_operand.vmem [shape: f32[10,20], index: 0, kind: input, shape index: {}]   ;;  %s925_s1 = inlined_call_operand.vmem [shape: f32[4,64,64], index: 1, kind: input, shape index: {}]   ;;  %s926_s2 = inlined_call_operand.vmem [shape: f32[4,64,1], index: 2, kind: input, shape index: {}]   ;;  %s927_s3 = inlined_call_operand.hbm [shape: f32[4,20], index: 3, kind: output, shape index: {}]  }
   0x1   :  { %v15_v0 = vld [vmem:[%s924_s0] sm:$0xff]  ;;  %v16_v1 = vld [vmem:[%s924_s0 + $0x8] sm:$0x3]  ;;  %695 = vmatprep.subr.bf16.mxu0 %v751_v2  ;;  %vm697_vm2 = vmpackc.low %vm48_vm0, %vm752_vm1  ;;  %v754_v4 = vmov 0.0   ;;  %vm38_vm4 = vcmask 80896   ;;  %v755_v7 = vmov 0  }
   0x2   :  { %v696_v3 = vpack.c.bf16 %v16_v1, %v15_v0  ;;  %634 = vmatprep.mubr.msk.f32.mxu0 %vm753_vm3, %v754_v4  ;;  %v20_v5 = vld [vmem:[%s926_s2] sm:$0xff]  ;;  %725 = vset.pattern.permute.xlu0 %v755_v7  ;;  %v22_v8 = vld [vmem:[%s926_s2 + $0x10] sm:$0xf]  ;;  %v21_v9 = vld [vmem:[%s926_s2 + $0x8] sm:$0xff] }
   0x3   :  { %v17_v6 = vld [vmem:[%s925_s1] sm:$0xff]  ;;  %25 = vperm.xlu0 %725, %v20_v5   ;;  %726 = vset.pattern.permute.xlu1 %v755_v7  ;;  %v18_v11 = vld [vmem:[%s925_s1 + $0x8] sm:$0xff] }
   0x4   :  { %698 = vmatpush3.bf16.msk.msra.mxu0 %vm697_vm2, %v696_v3  ;;  %35 = vperm.xlu1 %726, %v22_v8   ;;  %v568_v10 = vld [vmem:[%s926_s2 + $0x40] sm:$0xff] }
   0x5   :  { %703 = vmatprep.subr.bf16.mxu0 %v751_v2 }
   0x7   :  { %635 = vmatmul.mubr.msk.f32.vlgmr.msra.gmra.mrb[0].mxu0 %vm38_vm4, %v17_v6 }
   0x8   :  { %637 = vmatprep.mubr.msk.f32.mxu0 %vm753_vm3, %v754_v4 }
   0x9   :  { %8 = vsyncpa [#allocation3], 0  ;;  %30 = vperm.xlu0 %725, %v21_v9   ;;  %v569_v12 = vld [vmem:[%s926_s2 + $0x48] sm:$0xff]  ;;  %155 = vperm.xlu1 %726, %v568_v10   ;;  %v570_v13 = vld [vmem:[%s926_s2 + $0x50] sm:$0xff]  ;;  %vm193_vm5 = vcmask 162816   ;;  %vm218_vm6 = vcmask 1043456  }
   0xa   :  { %v19_v14 = vld [vmem:[%s925_s1 + $0x10] sm:$0xf]  ;;  %v571_v15 = vld [vmem:[%s926_s2 + $0x58] sm:$0xff]  ;;  %v572_v16 = vld [vmem:[%s926_s2 + $0x60] sm:$0xff]  ;;  %vm358_vm8 = vcmask 490496   ;;  %s756_s0 = smov [#allocation2]  }
   0xb   :  { %638 = vmatmul.mubr.msk.f32.gmra.mrb[2].mxu0 %vm38_vm4, %v18_v11  ;;  %v573_v17 = vld [vmem:[%s926_s2 + $0x68] sm:$0xff]  ;;  %v574_v18 = vld [vmem:[%s926_s2 + $0x70] sm:$0xff]  ;;  %v575_v19 = vld [vmem:[%s926_s2 + $0x78] sm:$0xf]  ;;  %s548_s19 = sshll.u32 %s756_s0, 4  ;;  %vm540_vm9 = vcmask 158720   ;;  %s549_s19 = int_to_ptr.vmem [resolvable:$true] %s548_s19 }
   0xc   :  { %640 = vmatprep.mubr.msk.f32.mxu0 %vm753_vm3, %v754_v4  ;;  %v588_v20 = vld [vmem:[%s926_s2 + $0x80] sm:$0xff]  ;;  %v589_v21 = vld [vmem:[%s926_s2 + $0x88] sm:$0xff]  ;;  %v590_v22 = vld [vmem:[%s926_s2 + $0x90] sm:$0xf]  ;;  %s727_s20 = scalar_lea.vmem %s549_s19, 64  ;;  %p732_p1 = scmp.lt.s32.totalorder %s549_s19, %s549_s19 }
   0xd   :  { %160 = vperm.xlu0 %725, %v569_v12   ;;  %165 = vperm.xlu1 %726, %v570_v13   ;;  %v596_v23 = vld [vmem:[%s926_s2 + $0xc0] sm:$0xf]  ;;  %v561_v41 = vld [vmem:[%s925_s1 + $0x48] sm:$0xff]  ;;  %v562_v42 = vld [vmem:[%s925_s1 + $0x50] sm:$0xff]  ;;  %p728_p0 = scmp.ne.s32.totalorder %s549_s19, %s727_s20  ;;  %p733_p2 = scmp.lt.s32.totalorder %s727_s20, %s727_s20 }
   0xe   :  { %v560_v24 = vld [vmem:[%s925_s1 + $0x40] sm:$0xff]  ;;  %v563_v43 = vld [vmem:[%s925_s1 + $0x58] sm:$0xff]  ;;  %v565_v45 = vld [vmem:[%s925_s1 + $0x68] sm:$0xff] }
   0xf   :  { %641 = vmatmul.mubr.msk.f32.gmra.mrb[4].mxu0 %vm38_vm4, %v19_v14  ;;  %649 = vmatprep.mubr.msk.f32.mxu1 %vm193_vm5, %v560_v24  ;;  %v564_v44 = vld [vmem:[%s925_s1 + $0x60] sm:$0xff]  ;;  %v566_v46 = vld [vmem:[%s925_s1 + $0x70] sm:$0xff]  ;;  %v567_v47 = vld [vmem:[%s925_s1 + $0x78] sm:$0xf]  ;;  %p734_p3 = por %p733_p2, %p732_p1 }
  0x10   :  { %677 = vmatprep.mubr.msk.f32.mxu0 %vm753_vm3, %v754_v4  ;;  %vm714_vm7 = vmpackc.low %vm218_vm6, %vm752_vm1 }
  0x11   :  { %170 = vperm.xlu0 %725, %v571_v15   ;;  %175 = vperm.xlu1 %726, %v572_v16   ;;  %p735_p4 = pnand %p734_p3, %p728_p0 }
  0x15   :  { %180 = vperm.xlu0 %725, %v573_v17   ;;  %185 = vperm.xlu1 %726, %v574_v18  }
  0x19   :  { %190 = vperm.xlu0 %725, %v575_v19   ;;  %345 = vperm.xlu1 %726, %v588_v20  }
  0x1d   :  { %350 = vperm.xlu0 %725, %v589_v21   ;;  %355 = vperm.xlu1 %726, %v590_v22   ;;  %v585_v22 = vld [vmem:[%s925_s1 + $0x80] sm:$0xff] }
  0x21   :  { %460 = vperm.xlu0 %725, %v596_v23   ;;  %v586_v23 = vld [vmem:[%s925_s1 + $0x88] sm:$0xff] }
  0x82   :  { %v26_v25 = vpop.permute.xlu0 %25 }
  0x83   :  { %v36_v35 = vpop.permute.xlu1 %35 }
  0x88   :  { %v31_v29 = vpop.permute.xlu0 %30  ;;  %v156_v49 = vpop.permute.xlu1 %155 }
  0x8c   :  { %v161_v48 = vpop.permute.xlu0 %160  ;;  %v166_v52 = vpop.permute.xlu1 %165 }
  0x90   :  { %v171_v50 = vpop.permute.xlu0 %170  ;;  %v176_v0 = vpop.permute.xlu1 %175 }
  0x94   :  { %v181_v61 = vpop.permute.xlu0 %180  ;;  %v186_v14 = vpop.permute.xlu1 %185 }
  0x98   :  { %v191_v11 = vpop.permute.xlu0 %190 }
  0xda   :  { %v118_v26 = vpop.f32.mrb[0].mxu0 }
  0xdb   :  { %v636_v27 = vpop.f32.mrb[1].mxu0  ;;  %v119_v28 = vadd.f32 %v118_v26, %v26_v25  ;;  %v346_v26 = vpop.permute.xlu1 %345 }
  0xdd   :  { %v132_v33 = vmax.f32 %v119_v28, 0.0  ;;  %v351_v28 = vpop.permute.xlu0 %350 }
  0xde   :  { %v123_v30 = vpop.f32.mrb[2].mxu0 }
  0xdf   :  { %v124_v31 = vadd.f32 %v123_v30, %v31_v29  ;;  %v639_v32 = vpop.f32.mrb[3].mxu0 }
  0xe1   :  { %v133_v34 = vmax.f32 %v124_v31, 0.0 }
  0xe2   :  { %v128_v36 = vpop.f32.mrb[4].mxu0 }
  0xe3   :  { %v129_v37 = vadd.f32 %v128_v36, %v36_v35  ;;  %v642_v38 = vpop.f32.mrb[5].mxu0  ;;  %v699_v39 = vpack.c.bf16 %v133_v34, %v132_v33  ;;  %v356_v34 = vpop.permute.xlu1 %355 }
  0xe5   :  { %v134_v40 = vmax.f32 %v129_v37, 0.0  ;;  %700 = vmatprep.subr.bf16.mxu1 %v699_v39 }
  0xe6   :  { %702 = vmatpush3.bf16.msra.mxu1 %v699_v39 }
  0xe7   :  { %647 = vmatprep.subr.msk.mxu1 %vm218_vm6, %v134_v40 }
  0xea   :  { %648 = vmatpush3.msk.msra.mxu1 %vm218_vm6, %v134_v40  ;;  %v595_v40 = vld [vmem:[%s925_s1 + $0xc0] sm:$0xf] }
  0xeb   :  { %650 = vmatmul.mubr.msk.f32.vlgmr.msra.gmra.mrb[0].mxu1 %vm193_vm5, %v561_v41  ;;  %716 = vmatprep.subr.bf16.mxu1 %v751_v2  ;;  %v461_v41 = vpop.permute.xlu0 %460 }
  0xec   :  { %652 = vmatprep.mubr.msk.f32.mxu1 %vm193_vm5, %v562_v42 }
  0xef   :  { %653 = vmatmul.mubr.msk.f32.gmra.mrb[2].mxu1 %vm193_vm5, %v563_v43 }
  0xf0   :  { %655 = vmatprep.mubr.msk.f32.mxu1 %vm193_vm5, %v564_v44 }
  0xf3   :  { %656 = vmatmul.mubr.msk.f32.gmra.mrb[4].mxu1 %vm193_vm5, %v565_v45 }
  0xf4   :  { %658 = vmatprep.mubr.msk.f32.mxu1 %vm193_vm5, %v566_v46 }
  0xf7   :  { %659 = vmatmul.mubr.msk.f32.gmra.mrb[6].mxu1 %vm193_vm5, %v567_v47 }
  0xf8   :  { %692 = vmatprep.mubr.msk.f32.mxu1 %vm753_vm3, %v754_v4 }
 0x1be   :  { %v651_v51 = vpop.f32.mrb[0].mxu1 }
 0x1bf   :  { %v294_v53 = vadd.f32 %v651_v51, %v161_v48  ;;  %v288_v54 = vpop.f32.mrb[1].mxu1 }
 0x1c0   :  { %v289_v55 = vadd.f32 %v288_v54, %v156_v49 }
 0x1c1   :  { %v328_v56 = vmax.f32 %v294_v53, 0.0 }
 0x1c2   :  { %v327_v57 = vmax.f32 %v289_v55, 0.0  ;;  %v654_v58 = vpop.f32.mrb[2].mxu1 }
 0x1c3   :  { %v304_v59 = vadd.f32 %v654_v58, %v171_v50  ;;  %v298_v60 = vpop.f32.mrb[3].mxu1 }
 0x1c4   :  { %v704_v62 = vpack.c.bf16 %v328_v56, %v327_v57  ;;  %v299_v63 = vadd.f32 %v298_v60, %v166_v52 }
 0x1c5   :  { %v330_v1 = vmax.f32 %v304_v59, 0.0 }
 0x1c6   :  { %v329_v3 = vmax.f32 %v299_v63, 0.0  ;;  %v657_v5 = vpop.f32.mrb[4].mxu1  ;;  %705 = vmatpush3.bf16.msra.mxu0 %v704_v62 }
 0x1c7   :  { %v314_v6 = vadd.f32 %v657_v5, %v181_v61  ;;  %v308_v7 = vpop.f32.mrb[5].mxu1  ;;  %706 = vmatprep.subr.bf16.mxu0 %v751_v2 }
 0x1c8   :  { %v707_v8 = vpack.c.bf16 %v330_v1, %v329_v3  ;;  %v309_v9 = vadd.f32 %v308_v7, %v176_v0 }
 0x1c9   :  { %v332_v10 = vmax.f32 %v314_v6, 0.0 }
 0x1ca   :  { %v331_v12 = vmax.f32 %v309_v9, 0.0  ;;  %v660_v13 = vpop.f32.mrb[6].mxu1  ;;  %708 = vmatpush3.bf16.msra.mxu0 %v707_v8 }
 0x1cb   :  { %v324_v15 = vadd.f32 %v660_v13, %v191_v11  ;;  %v318_v16 = vpop.f32.mrb[7].mxu1  ;;  %709 = vmatprep.subr.bf16.mxu0 %v751_v2 }
 0x1cc   :  { %v710_v17 = vpack.c.bf16 %v332_v10, %v331_v12  ;;  %v319_v18 = vadd.f32 %v318_v16, %v186_v14 }
 0x1cd   :  { %v334_v19 = vmax.f32 %v324_v15, 0.0 }
 0x1ce   :  { %v333_v20 = vmax.f32 %v319_v18, 0.0  ;;  %711 = vmatpush3.bf16.msra.mxu0 %v710_v17 }
 0x1cf   :  { %712 = vmatprep.subr.bf16.mxu0 %v751_v2  ;;  %v587_v2 = vld [vmem:[%s925_s1 + $0x90] sm:$0xf] }
 0x1d0   :  { %v713_v21 = vpack.c.bf16 %v334_v19, %v333_v20 }
 0x1d2   :  { %715 = vmatpush3.bf16.msk.msra.mxu0 %vm714_vm7, %v713_v21 }
 0x1d5   :  { %678 = vmatmul.mubr.msk.f32.vlgmr.msra.gmra.mrb[6].mxu0 %vm358_vm8, %v585_v22 }
 0x1d6   :  { %680 = vmatprep.mubr.msk.f32.mxu0 %vm753_vm3, %v754_v4 }
 0x1d9   :  { %681 = vmatmul.mubr.msk.f32.gmra.mrb[8].mxu0 %vm358_vm8, %v586_v23 }
 0x1da   :  { %683 = vmatprep.mubr.msk.f32.mxu0 %vm753_vm3, %v754_v4 }
 0x1dd   :  { %684 = vmatmul.mubr.msk.f32.gmra.mrb[10].mxu0 %vm358_vm8, %v587_v2 }
 0x2a8   :  { %v437_v24 = vpop.f32.mrb[6].mxu0 }
 0x2a9   :  { %v679_v25 = vpop.f32.mrb[7].mxu0  ;;  %v438_v27 = vadd.f32 %v437_v24, %v346_v26 }
 0x2ab   :  { %v451_v32 = vmax.f32 %v438_v27, 0.0 }
 0x2ac   :  { %v442_v29 = vpop.f32.mrb[8].mxu0 }
 0x2ad   :  { %v443_v30 = vadd.f32 %v442_v29, %v351_v28  ;;  %v682_v31 = vpop.f32.mrb[9].mxu0 }
 0x2af   :  { %v452_v33 = vmax.f32 %v443_v30, 0.0 }
 0x2b0   :  { %v447_v35 = vpop.f32.mrb[10].mxu0 }
 0x2b1   :  { %v717_v36 = vpack.c.bf16 %v452_v33, %v451_v32  ;;  %v448_v37 = vadd.f32 %v447_v35, %v356_v34  ;;  %v685_v38 = vpop.f32.mrb[11].mxu0 }
 0x2b3   :  { %718 = vmatpush3.bf16.msra.mxu1 %v717_v36  ;;  %v453_v39 = vmax.f32 %v448_v37, 0.0 }
 0x2b4   :  { %690 = vmatprep.subr.mxu1 %v754_v4 }
 0x2b7   :  { %691 = vmatpush3.msk.msra.mxu1 %vm218_vm6, %v453_v39 }
 0x2b8   :  { %693 = vmatmul.mubr.msk.f32.vlgmr.msra.gmra.mrb[8].mxu1 %vm193_vm5, %v595_v40 }
 0x38b   :  { %v535_v42 = vpop.f32.mrb[8].mxu1 }
 0x38c   :  { %v536_v43 = vadd.f32 %v535_v42, %v461_v41  ;;  %v694_v44 = vpop.f32.mrb[9].mxu1 }
 0x38e   :  { %v539_v45 = vmax.f32 %v536_v43, 0.0 }
 0x390   :  { %541 = vst.msk [vmem:[#allocation2] sm:$0xf] %vm540_vm9, %v539_v45 }
 0x391   :  { %738 = shalt.err (!%p735_p4)
}
 0x392   :  { %s739_s22 = scalar_lea.hbm %s927_s3, 64 }
 0x393   :  { %p740_p5 = scmp.ne.s32.totalorder %s927_s3, %s739_s22  ;;  %p743_p6 = scmp.lt.u32.totalorder %s739_s22, %s927_s3 }
 0x395   :  { %p745_p7 = pnand %p743_p6, %p740_p5 }
 0x397   :  { %748 = shalt.err (!%p745_p7)
}
 0x398   :  { %551 = dma.vmem_to_hbm [thread:$0]  %s549_s19, 64, %s927_s3, [#allocation3]  }
 0x399   :  { %749 = dma.done.wait [#allocation3], 64  }
 0x39a   :  { %750 = vsyncadd [#allocation3], 4294967232 }
 0x39b   :  { %555 = vsyncpa [#allocation3], 1 }

</bundles_post_ra>
